<compile_context>
chip_gen: v7x
topology: tpu7x:2x2x1
jax: 0.10.0
libtpu: 0.0.40
codegen_flags: <defaults>
</compile_context>

<pallas_src>
import math

import jax
import jax.numpy as jnp
from jax import lax
from jax.experimental import pallas as pl
from jax.experimental.pallas import tpu as pltpu


def _round_up(x, m):
    return ((x + m - 1) // m) * m


def _pick_tile(b128, *, want_two_tiles):
    """Largest 128-multiple tile (<=512) dividing the padded batch.

    want_two_tiles additionally requires >=2 tiles so the 'parallel' row axis can
    split across v7x's two TensorCores (free on v5e/v6e, ~2x on v7x).
    """
    for t in (512, 256, 128):
        if b128 % t == 0 and (not want_two_tiles or b128 // t >= 2):
            return t
    return 128


def _make_kernel(batch, tile_q, tile_k, n_d, has_key_padding, first_padded_key_tile,
                 use_sim_scratch):
    def body(fq_ref, fk_ref, lq_ref, lk_ref, loss_ref, pos_ref,
             pos_acc, neg_acc, sim_acc):
        i = pl.program_id(0)          # query-row tile   ("parallel")
        j = pl.program_id(1)          # key-column tile  ("arbitrary")
        d = pl.program_id(2)          # feature chunk    ("arbitrary", innermost)
        n_k = pl.num_programs(1)

        @pl.when((j == 0) & (d == 0))
        def _init():
            pos_acc[...] = jnp.zeros_like(pos_acc)
            neg_acc[...] = jnp.zeros_like(neg_acc)

        # (tile_k, tile_q) partial similarity: keys on sublanes, queries on lanes.
        # Queries were pre-scaled by 1/temperature in the wrapper.
        partial = lax.dot_general(
            fk_ref[...], fq_ref[...],
            (((1,), (1,)), ((), ())),
            preferred_element_type=jnp.float32,
        )

        def accumulate(sim):
            e = jnp.exp(sim)   # EUP; no max-subtraction (L2-normalized features)
            same_label = (jnp.broadcast_to(lk_ref[...], (tile_k, tile_q)) ==
                          jnp.broadcast_to(lq_ref[...], (tile_k, tile_q)))

            # Mask work only where it matters: tiles touching the diagonal and/or
            # tiles containing zero-padded key rows.
            touches_diag = ((i * tile_q) < ((j + 1) * tile_k)) & \
                           ((j * tile_k) < ((i + 1) * tile_q))
            needs_mask = touches_diag
            if has_key_padding:
                needs_mask = needs_mask | (j >= first_padded_key_tile)

            @pl.when(needs_mask)
            def _masked():
                key_g = j * tile_k + lax.broadcasted_iota(
                    jnp.int32, (tile_k, tile_q), 0)
                qry_g = i * tile_q + lax.broadcasted_iota(
                    jnp.int32, (tile_k, tile_q), 1)
                keep = key_g != qry_g
                if has_key_padding:
                    keep = keep & (key_g < batch)
                e_neg = jnp.where(keep, e, 0.0)           # reused for pos & neg
                neg_acc[...] += jnp.sum(e_neg, axis=0, keepdims=True)
                pos_acc[...] += jnp.sum(jnp.where(same_label, e_neg, 0.0),
                                        axis=0, keepdims=True)

            @pl.when(jnp.logical_not(needs_mask))
            def _plain():
                neg_acc[...] += jnp.sum(e, axis=0, keepdims=True)
                pos_acc[...] += jnp.sum(jnp.where(same_label, e, 0.0),
                                        axis=0, keepdims=True)

        if n_d == 1:
            accumulate(partial)
        else:
            @pl.when(d == 0)
            def _first():
                sim_acc[...] = partial

            @pl.when(d > 0)
            def _rest():
                sim_acc[...] += partial

            @pl.when(d == n_d - 1)
            def _last():
                accumulate(sim_acc[...])

        @pl.when((j == n_k - 1) & (d == n_d - 1))
        def _finalize():
            pos_c = jnp.maximum(pos_acc[...], 1e-8)
            neg_c = jnp.maximum(neg_acc[...], 1e-8)
            loss_ref[...] = -jnp.log(pos_c / neg_c)       # lane-dense (1, tile_q)
            pos_ref[...] = pos_c

    if use_sim_scratch:
        def kernel(fq, fk, lq, lk, loss, pos, pa, na, sa):
            body(fq, fk, lq, lk, loss, pos, pa, na, sa)
    else:
        def kernel(fq, fk, lq, lk, loss, pos, pa, na):
            body(fq, fk, lq, lk, loss, pos, pa, na, None)
    return kernel


def contrastive_loss(features, labels, temperature=0.1, *,
                     tile_q=None, tile_k=None, tile_d=None,
                     compute_dtype=jnp.bfloat16,
                     query_pipeline_buffers=None,   # set 1 on v7x to save VMEM
                     key_pipeline_buffers=None,     # set 3 for small-D / mem-bound
                     vmem_budget_bytes=32 * 1024 * 1024,
                     vmem_limit_bytes=None):
    """features: [B, D] (assumed L2-normalized), labels: [B] integer."""
    B, D = features.shape
    inv_temp = 1.0 / float(temperature)

    # --- tile selection (generation-aware defaults, minimal padding) ---
    b128 = _round_up(B, 128)
    if tile_q is None:
        tile_q = _pick_tile(b128, want_two_tiles=True)
    if tile_k is None:
        tile_k = _pick_tile(b128, want_two_tiles=False)
    b_pad = _round_up(B, math.lcm(tile_q, tile_k))

    dtype_bytes = jnp.dtype(compute_dtype).itemsize
    q_bufs = query_pipeline_buffers or 2
    k_bufs = key_pipeline_buffers or 2

    d128 = _round_up(D, 128)
    if tile_d is None:
        # Chunk the contraction dim so feature blocks fit the VMEM budget
        # (important on v7x's 64 MiB part with large D).
        other = 4 * tile_k * tile_q * 5 + 64 * tile_q     # sim temps/scratch/accs
        per_d = dtype_bytes * (k_bufs * tile_k + q_bufs * tile_q)
        avail = max(vmem_budget_bytes - other, per_d * 128)
        tile_d = max(128, min(d128, (avail // per_d) // 128 * 128))
    d_pad = _round_up(D, tile_d)

    n_q, n_k, n_d = b_pad // tile_q, b_pad // tile_k, d_pad // tile_d
    has_key_padding = b_pad > B
    first_padded_key_tile = B // tile_k

    # --- operands: queries pre-scaled by 1/T (separate array from the keys, so
    # the scale is applied exactly once); labels as (B,1) column and (1,B) row ---
    f32 = features.astype(jnp.float32)
    fq = jnp.zeros((b_pad, d_pad), compute_dtype).at[:B, :D].set(
        (f32 * inv_temp).astype(compute_dtype))
    fk = jnp.zeros((b_pad, d_pad), compute_dtype).at[:B, :D].set(
        f32.astype(compute_dtype))
    lab = labels.astype(jnp.int32)
    lab_col = jnp.zeros((b_pad, 1), jnp.int32).at[:B, 0].set(lab)   # keys (sublane)
    lab_row = lab_col.reshape(1, b_pad)                             # queries (lane)

    # --- BlockSpecs ---
    def _spec(shape, index_map, buffers):
        if buffers is None:
            return pl.BlockSpec(shape, index_map)
        return pl.BlockSpec(shape, index_map, pipeline_mode=pl.Buffered(buffers))

    in_specs = [
        _spec((tile_q, tile_d), lambda i, j, d: (i, d), query_pipeline_buffers),
        _spec((tile_k, tile_d), lambda i, j, d: (j, d), key_pipeline_buffers),
        _spec((1, tile_q), lambda i, j, d: (0, i), query_pipeline_buffers),
        pl.BlockSpec((tile_k, 1), lambda i, j, d: (j, 0)),
    ]
    out_specs = (
        pl.BlockSpec((1, tile_q), lambda i, j, d: (0, i)),   # per-row loss
        pl.BlockSpec((1, tile_q), lambda i, j, d: (0, i)),   # per-row pos_sum
    )
    scratch = [pltpu.VMEM((1, tile_q), jnp.float32),          # pos accumulator
               pltpu.VMEM((1, tile_q), jnp.float32)]          # neg accumulator
    if n_d > 1:
        scratch.append(pltpu.VMEM((tile_k, tile_q), jnp.float32))  # sim accumulator

    # --- VMEM limit: raise above the conservative scoped default when needed ---
    est = (dtype_bytes * tile_d * (k_bufs * tile_k + q_bufs * tile_q)
           + 4 * tile_k * tile_q * (5 if n_d > 1 else 4)
           + 64 * tile_q)
    if vmem_limit_bytes is None and est > 12 * 1024 * 1024:
        vmem_limit_bytes = min(max(int(est * 1.4), 32 * 1024 * 1024),
                               48 * 1024 * 1024)

    grid_spec = pltpu.PrefetchScalarGridSpec(
        num_scalar_prefetch=0,
        grid=(n_q, n_k, n_d),
        in_specs=in_specs,
        out_specs=out_specs,
        scratch_shapes=scratch,
    )

    loss_rows, pos_rows = pl.pallas_call(
        _make_kernel(B, tile_q, tile_k, n_d, has_key_padding,
                     first_padded_key_tile, use_sim_scratch=(n_d > 1)),
        out_shape=(jax.ShapeDtypeStruct((1, b_pad), jnp.float32),
                   jax.ShapeDtypeStruct((1, b_pad), jnp.float32)),
        grid_spec=grid_spec,
        compiler_params=pltpu.CompilerParams(
            dimension_semantics=("parallel", "arbitrary", "arbitrary"),
            vmem_limit_bytes=vmem_limit_bytes),
    )(fq, fk, lab_row, lab_col)

    # Final masked mean over valid rows (tiny; plain XLA).  Padded rows sliced off.
    loss_rows = loss_rows.reshape(-1)[:B]
    pos_rows = pos_rows.reshape(-1)[:B]
    valid = pos_rows > 1e-8
    nv = jnp.sum(valid.astype(jnp.float32))
    loss_sum = jnp.sum(jnp.where(valid, loss_rows, 0.0))
    return jnp.where(nv > 0.0, loss_sum / jnp.maximum(nv, 1.0), 0.0)


def _reference(features, labels, temperature=0.1):
    """Pure-JAX reference mirroring the PyTorch forward."""
    B = features.shape[0]
    sim = jnp.matmul(features, features.T,
                     precision=jax.lax.Precision.HIGHEST) / temperature
    labels_eq = (labels[:, None] == labels[None, :]).astype(jnp.float32)
    eye = jnp.eye(B, dtype=bool)
    labels_eq = jnp.where(eye, 0.0, labels_eq)
    exp_sim = jnp.exp(sim)
    exp_sim = jnp.where(eye, 0.0, exp_sim)
    pos_sum = jnp.maximum((exp_sim * labels_eq).sum(axis=1), 1e-8)
    neg_sum = jnp.maximum(exp_sim.sum(axis=1), 1e-8)
    loss = -jnp.log(pos_sum / neg_sum)
    valid = pos_sum > 1e-8
    nv = valid.sum()
    return jnp.where(nv > 0,
                     jnp.where(valid, loss, 0.0).sum() / jnp.maximum(nv, 1),
                     0.0)


if __name__ == "__main__":
    k1, k2, k3, k4, k5, k6 = jax.random.split(jax.random.PRNGKey(0), 6)

    # Case 1: small shape matching the module spec (features [B, D], labels [B]).
    B, D = 8, 32
    feats = jax.random.normal(k1, (B, D), dtype=jnp.float32)
    feats = feats / jnp.linalg.norm(feats, axis=1, keepdims=True)
    labels = jax.random.randint(k2, (B,), 0, 3, dtype=jnp.int32)
    ref = _reference(feats, labels, temperature=0.1)

    loss_bf16 = jax.block_until_ready(contrastive_loss(feats, labels, temperature=0.1))
    assert jnp.allclose(loss_bf16, ref, rtol=5e-2, atol=1e-1), (loss_bf16, ref)
    loss_f32 = jax.block_until_ready(
        contrastive_loss(feats, labels, temperature=0.1, compute_dtype=jnp.float32))
    assert jnp.allclose(loss_f32, ref, rtol=5e-2, atol=1e-1), (loss_f32, ref)

    # Case 2: non-multiple batch -> exercises padded-key masking and the
    # multi-row-tile accumulation with default (auto-picked) tiles.
    B2, D2 = 200, 96
    feats2 = jax.random.normal(k3, (B2, D2), dtype=jnp.float32)
    feats2 = feats2 / jnp.linalg.norm(feats2, axis=1, keepdims=True)
    labels2 = jax.random.randint(k4, (B2,), 0, 5, dtype=jnp.int32)
    ref2 = _reference(feats2, labels2, temperature=0.1)
    loss2 = jax.block_until_ready(contrastive_loss(feats2, labels2, temperature=0.1))
    assert jnp.allclose(loss2, ref2, rtol=5e-2, atol=1e-1), (loss2, ref2)

    # Case 3: explicit 128-tiles with a chunked feature dim -> exercises the
    # mask-free fast path (off-diagonal, unpadded tiles) and the D-accumulation.
    B3, D3 = 256, 160
    feats3 = jax.random.normal(k5, (B3, D3), dtype=jnp.float32)
    feats3 = feats3 / jnp.linalg.norm(feats3, axis=1, keepdims=True)
    labels3 = jax.random.randint(k6, (B3,), 0, 7, dtype=jnp.int32)
    ref3 = _reference(feats3, labels3, temperature=0.1)
    loss3 = jax.block_until_ready(
        contrastive_loss(feats3, labels3, temperature=0.1,
                         tile_q=128, tile_k=128, tile_d=128))
    assert jnp.allclose(loss3, ref3, rtol=5e-2, atol=1e-1), (loss3, ref3)

    print("KERNEL_OK")
</pallas_src>

<mosaic_0001>
module attributes {stable_mosaic.version = 11 : i64} {
  func.func @kernel(%arg0: i32, %arg1: i32, %arg2: i32, %arg3: memref<128x128xbf16, #tpu.memory_space<vmem>>, %arg4: memref<128x128xbf16, #tpu.memory_space<vmem>>, %arg5: memref<1x128xi32, #tpu.memory_space<vmem>>, %arg6: memref<128x1xi32, #tpu.memory_space<vmem>>, %arg7: memref<1x128xf32, #tpu.memory_space<vmem>>, %arg8: memref<1x128xf32, #tpu.memory_space<vmem>>, %arg9: memref<1x128xf32, #tpu.memory_space<vmem>>, %arg10: memref<1x128xf32, #tpu.memory_space<vmem>>) attributes {dimension_semantics = [#tpu.dimension_semantics<parallel>, #tpu.dimension_semantics<arbitrary>, #tpu.dimension_semantics<arbitrary>], iteration_bounds = array<i64: 1, 1, 1>, scalar_prefetch = 0 : i64, scratch_operands = 2 : i64, tpu.core_type = #tpu.core_type<tc>, window_params = [{transform_indices = @transform_0, window_bounds = array<i64: 128, 128>}, {transform_indices = @transform_1, window_bounds = array<i64: 128, 128>}, {transform_indices = @transform_2, window_bounds = array<i64: 1, 128>}, {transform_indices = @transform_3, window_bounds = array<i64: 128, 1>}, {transform_indices = @transform_4, window_bounds = array<i64: 1, 128>}, {transform_indices = @transform_5, window_bounds = array<i64: 1, 128>}]} {
    %c0_i32 = arith.constant 0 : i32
    %0 = arith.cmpi eq, %arg1, %c0_i32 : i32
    %c0_i32_0 = arith.constant 0 : i32
    %1 = arith.cmpi eq, %arg2, %c0_i32_0 : i32
    %2 = arith.andi %0, %1 : i1
    %3 = arith.extui %2 : i1 to i32
    %c0_i32_1 = arith.constant 0 : i32
    %4 = arith.cmpi ne, %3, %c0_i32_1 : i32
    scf.if %4 {
      %cst_19 = arith.constant 0.000000e+00 : f32
      %37 = vector.broadcast %cst_19 : f32 to vector<1x128xf32>
      %c0_20 = arith.constant 0 : index
      %c0_21 = arith.constant 0 : index
      %38 = vector.load %arg9[%c0_20, %c0_21] : memref<1x128xf32, #tpu.memory_space<vmem>>, vector<1x128xf32>
      tpu.vector_store %arg9[%c0_20, %c0_21], %37 {strides = array<i32>} : memref<1x128xf32, #tpu.memory_space<vmem>>, vector<1x128xf32>,
      %cst_22 = arith.constant 0.000000e+00 : f32
      %39 = vector.broadcast %cst_22 : f32 to vector<1x128xf32>
      %c0_23 = arith.constant 0 : index
      %c0_24 = arith.constant 0 : index
      %40 = vector.load %arg10[%c0_23, %c0_24] : memref<1x128xf32, #tpu.memory_space<vmem>>, vector<1x128xf32>
      tpu.vector_store %arg10[%c0_23, %c0_24], %39 {strides = array<i32>} : memref<1x128xf32, #tpu.memory_space<vmem>>, vector<1x128xf32>,
    } else {
    }
    %c0 = arith.constant 0 : index
    %c0_2 = arith.constant 0 : index
    %5 = vector.load %arg4[%c0, %c0_2] : memref<128x128xbf16, #tpu.memory_space<vmem>>, vector<128x128xbf16>
    %c0_3 = arith.constant 0 : index
    %c0_4 = arith.constant 0 : index
    %6 = vector.load %arg3[%c0_3, %c0_4] : memref<128x128xbf16, #tpu.memory_space<vmem>>, vector<128x128xbf16>
    %cst = arith.constant dense<0.000000e+00> : vector<128x128xf32>
    %7 = tpu.matmul %5, %6, %cst {dimension_numbers = #tpu.dot_dimension_numbers<[1], [1], [0], [0], [0, 0, 1, 0], [], []>} : vector<128x128xbf16>, vector<128x128xbf16>, vector<128x128xf32> -> vector<128x128xf32>
    %8 = math.exp %7 : vector<128x128xf32>
    %c0_5 = arith.constant 0 : index
    %c0_6 = arith.constant 0 : index
    %9 = vector.load %arg6[%c0_5, %c0_6] : memref<128x1xi32, #tpu.memory_space<vmem>>, vector<128x1xi32>
    %10 = vector.shape_cast %9 : vector<128x1xi32> to vector<128x1xi32>
    %11 = vector.broadcast %10 : vector<128x1xi32> to vector<128x128xi32>
    %c0_7 = arith.constant 0 : index
    %c0_8 = arith.constant 0 : index
    %12 = vector.load %arg5[%c0_7, %c0_8] : memref<1x128xi32, #tpu.memory_space<vmem>>, vector<1x128xi32>
    %13 = vector.shape_cast %12 : vector<1x128xi32> to vector<1x128xi32>
    %14 = vector.broadcast %13 : vector<1x128xi32> to vector<128x128xi32>
    %15 = arith.cmpi eq, %11, %14 : vector<128x128xi32>
    %c128_i32 = arith.constant 128 : i32
    %16 = arith.muli %arg0, %c128_i32 : i32
    %c1_i32 = arith.constant 1 : i32
    %17 = arith.addi %arg1, %c1_i32 : i32
    %c128_i32_9 = arith.constant 128 : i32
    %18 = arith.muli %17, %c128_i32_9 : i32
    %19 = arith.cmpi slt, %16, %18 : i32
    %c128_i32_10 = arith.constant 128 : i32
    %20 = arith.muli %arg1, %c128_i32_10 : i32
    %c1_i32_11 = arith.constant 1 : i32
    %21 = arith.addi %arg0, %c1_i32_11 : i32
    %c128_i32_12 = arith.constant 128 : i32
    %22 = arith.muli %21, %c128_i32_12 : i32
    %23 = arith.cmpi slt, %20, %22 : i32
    %24 = arith.andi %19, %23 : i1
    %c0_i32_13 = arith.constant 0 : i32
    %25 = arith.cmpi sge, %arg1, %c0_i32_13 : i32
    %26 = arith.ori %24, %25 : i1
    %27 = arith.extui %26 : i1 to i32
    %c0_i32_14 = arith.constant 0 : i32
    %28 = arith.cmpi ne, %27, %c0_i32_14 : i32
    scf.if %28 {
      %c128_i32_19 = arith.constant 128 : i32
      %37 = arith.muli %arg1, %c128_i32_19 : i32
      %38 = tpu.iota {dimensions = array<i32: 0>} : vector<128x128xi32>
      %39 = vector.broadcast %37 : i32 to vector<128x128xi32>
      %40 = arith.addi %39, %38 : vector<128x128xi32>
      %c128_i32_20 = arith.constant 128 : i32
      %41 = arith.muli %arg0, %c128_i32_20 : i32
      %42 = tpu.iota {dimensions = array<i32: 1>} : vector<128x128xi32>
      %43 = vector.broadcast %41 : i32 to vector<128x128xi32>
      %44 = arith.addi %43, %42 : vector<128x128xi32>
      %45 = arith.cmpi ne, %40, %44 : vector<128x128xi32>
      %c8_i32 = arith.constant 8 : i32
      %46 = vector.broadcast %c8_i32 : i32 to vector<128x128xi32>
      %47 = arith.cmpi slt, %40, %46 : vector<128x128xi32>
      %48 = arith.andi %45, %47 : vector<128x128xi1>
      %cst_21 = arith.constant 0.000000e+00 : f32
      %49 = vector.broadcast %cst_21 : f32 to vector<128x128xf32>
      %50 = arith.select %48, %8, %49 : vector<128x128xi1>, vector<128x128xf32>
      %c0_22 = arith.constant 0 : index
      %c0_23 = arith.constant 0 : index
      %51 = vector.load %arg10[%c0_22, %c0_23] : memref<1x128xf32, #tpu.memory_space<vmem>>, vector<1x128xf32>
      %cst_24 = arith.constant dense<0.000000e+00> : vector<128xf32>
      %52 = vector.multi_reduction <add>, %50, %cst_24 [0] : vector<128x128xf32> to vector<128xf32>
      %53 = vector.shape_cast %52 : vector<128xf32> to vector<1x128xf32>
      %54 = arith.addf %51, %53 : vector<1x128xf32>
      %c0_25 = arith.constant 0 : index
      %c0_26 = arith.constant 0 : index
      %55 = vector.load %arg10[%c0_25, %c0_26] : memref<1x128xf32, #tpu.memory_space<vmem>>, vector<1x128xf32>
      tpu.vector_store %arg10[%c0_25, %c0_26], %54 {strides = array<i32>} : memref<1x128xf32, #tpu.memory_space<vmem>>, vector<1x128xf32>,
      %c0_27 = arith.constant 0 : index
      %c0_28 = arith.constant 0 : index
      %56 = vector.load %arg9[%c0_27, %c0_28] : memref<1x128xf32, #tpu.memory_space<vmem>>, vector<1x128xf32>
      %cst_29 = arith.constant 0.000000e+00 : f32
      %57 = vector.broadcast %cst_29 : f32 to vector<128x128xf32>
      %58 = arith.select %15, %50, %57 : vector<128x128xi1>, vector<128x128xf32>
      %cst_30 = arith.constant dense<0.000000e+00> : vector<128xf32>
      %59 = vector.multi_reduction <add>, %58, %cst_30 [0] : vector<128x128xf32> to vector<128xf32>
      %60 = vector.shape_cast %59 : vector<128xf32> to vector<1x128xf32>
      %61 = arith.addf %56, %60 : vector<1x128xf32>
      %c0_31 = arith.constant 0 : index
      %c0_32 = arith.constant 0 : index
      %62 = vector.load %arg9[%c0_31, %c0_32] : memref<1x128xf32, #tpu.memory_space<vmem>>, vector<1x128xf32>
      tpu.vector_store %arg9[%c0_31, %c0_32], %61 {strides = array<i32>} : memref<1x128xf32, #tpu.memory_space<vmem>>, vector<1x128xf32>,
    } else {
    }
    %true = arith.constant true
    %29 = arith.xori %26, %true : i1
    %30 = arith.extui %29 : i1 to i32
    %c0_i32_15 = arith.constant 0 : i32
    %31 = arith.cmpi ne, %30, %c0_i32_15 : i32
    scf.if %31 {
      %c0_19 = arith.constant 0 : index
      %c0_20 = arith.constant 0 : index
      %37 = vector.load %arg10[%c0_19, %c0_20] : memref<1x128xf32, #tpu.memory_space<vmem>>, vector<1x128xf32>
      %cst_21 = arith.constant dense<0.000000e+00> : vector<128xf32>
      %38 = vector.multi_reduction <add>, %8, %cst_21 [0] : vector<128x128xf32> to vector<128xf32>
      %39 = vector.shape_cast %38 : vector<128xf32> to vector<1x128xf32>
      %40 = arith.addf %37, %39 : vector<1x128xf32>
      %c0_22 = arith.constant 0 : index
      %c0_23 = arith.constant 0 : index
      %41 = vector.load %arg10[%c0_22, %c0_23] : memref<1x128xf32, #tpu.memory_space<vmem>>, vector<1x128xf32>
      tpu.vector_store %arg10[%c0_22, %c0_23], %40 {strides = array<i32>} : memref<1x128xf32, #tpu.memory_space<vmem>>, vector<1x128xf32>,
      %c0_24 = arith.constant 0 : index
      %c0_25 = arith.constant 0 : index
      %42 = vector.load %arg9[%c0_24, %c0_25] : memref<1x128xf32, #tpu.memory_space<vmem>>, vector<1x128xf32>
      %cst_26 = arith.constant 0.000000e+00 : f32
      %43 = vector.broadcast %cst_26 : f32 to vector<128x128xf32>
      %44 = arith.select %15, %8, %43 : vector<128x128xi1>, vector<128x128xf32>
      %cst_27 = arith.constant dense<0.000000e+00> : vector<128xf32>
      %45 = vector.multi_reduction <add>, %44, %cst_27 [0] : vector<128x128xf32> to vector<128xf32>
      %46 = vector.shape_cast %45 : vector<128xf32> to vector<1x128xf32>
      %47 = arith.addf %42, %46 : vector<1x128xf32>
      %c0_28 = arith.constant 0 : index
      %c0_29 = arith.constant 0 : index
      %48 = vector.load %arg9[%c0_28, %c0_29] : memref<1x128xf32, #tpu.memory_space<vmem>>, vector<1x128xf32>
      tpu.vector_store %arg9[%c0_28, %c0_29], %47 {strides = array<i32>} : memref<1x128xf32, #tpu.memory_space<vmem>>, vector<1x128xf32>,
    } else {
    }
    %c0_i32_16 = arith.constant 0 : i32
    %32 = arith.cmpi eq, %arg1, %c0_i32_16 : i32
    %c0_i32_17 = arith.constant 0 : i32
    %33 = arith.cmpi eq, %arg2, %c0_i32_17 : i32
    %34 = arith.andi %32, %33 : i1
    %35 = arith.extui %34 : i1 to i32
    %c0_i32_18 = arith.constant 0 : i32
    %36 = arith.cmpi ne, %35, %c0_i32_18 : i32
    scf.if %36 {
      %c0_19 = arith.constant 0 : index
      %c0_20 = arith.constant 0 : index
      %37 = vector.load %arg9[%c0_19, %c0_20] : memref<1x128xf32, #tpu.memory_space<vmem>>, vector<1x128xf32>
      %cst_21 = arith.constant 9.99999993E-9 : f32
      %38 = vector.broadcast %cst_21 : f32 to vector<1x128xf32>
      %39 = arith.maximumf %37, %38 : vector<1x128xf32>
      %c0_22 = arith.constant 0 : index
      %c0_23 = arith.constant 0 : index
      %40 = vector.load %arg10[%c0_22, %c0_23] : memref<1x128xf32, #tpu.memory_space<vmem>>, vector<1x128xf32>
      %cst_24 = arith.constant 9.99999993E-9 : f32
      %41 = vector.broadcast %cst_24 : f32 to vector<1x128xf32>
      %42 = arith.maximumf %40, %41 : vector<1x128xf32>
      %43 = arith.divf %39, %42 : vector<1x128xf32>
      %44 = math.log %43 : vector<1x128xf32>
      %cst_25 = arith.constant 0.000000e+00 : f32
      %45 = vector.broadcast %cst_25 : f32 to vector<1x128xf32>
      %46 = arith.subf %45, %44 : vector<1x128xf32>
      %c0_26 = arith.constant 0 : index
      %c0_27 = arith.constant 0 : index
      %47 = vector.load %arg7[%c0_26, %c0_27] : memref<1x128xf32, #tpu.memory_space<vmem>>, vector<1x128xf32>
      tpu.vector_store %arg7[%c0_26, %c0_27], %46 {strides = array<i32>} : memref<1x128xf32, #tpu.memory_space<vmem>>, vector<1x128xf32>,
      %c0_28 = arith.constant 0 : index
      %c0_29 = arith.constant 0 : index
      %48 = vector.load %arg8[%c0_28, %c0_29] : memref<1x128xf32, #tpu.memory_space<vmem>>, vector<1x128xf32>
      tpu.vector_store %arg8[%c0_28, %c0_29], %39 {strides = array<i32>} : memref<1x128xf32, #tpu.memory_space<vmem>>, vector<1x128xf32>,
    } else {
    }
    return
  }
  func.func @transform_0(%arg0: i32, %arg1: i32, %arg2: i32) -> (i32, i32) {
    %c0_i32 = arith.constant 0 : i32
    return %arg0, %arg2 : i32, i32
  }
  func.func @transform_1(%arg0: i32, %arg1: i32, %arg2: i32) -> (i32, i32) {
    %c0_i32 = arith.constant 0 : i32
    return %arg1, %arg2 : i32, i32
  }
  func.func @transform_2(%arg0: i32, %arg1: i32, %arg2: i32) -> (i32, i32) {
    %c0_i32 = arith.constant 0 : i32
    %c0_i32_0 = arith.constant 0 : i32
    return %c0_i32, %arg0 : i32, i32
  }
  func.func @transform_3(%arg0: i32, %arg1: i32, %arg2: i32) -> (i32, i32) {
    %c0_i32 = arith.constant 0 : i32
    %c0_i32_0 = arith.constant 0 : i32
    return %arg1, %c0_i32 : i32, i32
  }
  func.func @transform_4(%arg0: i32, %arg1: i32, %arg2: i32) -> (i32, i32) {
    %c0_i32 = arith.constant 0 : i32
    %c0_i32_0 = arith.constant 0 : i32
    return %c0_i32, %arg0 : i32, i32
  }
  func.func @transform_5(%arg0: i32, %arg1: i32, %arg2: i32) -> (i32, i32) {
    %c0_i32 = arith.constant 0 : i32
    %c0_i32_0 = arith.constant 0 : i32
    return %c0_i32, %arg0 : i32, i32
  }
}

</mosaic_0001>

<bundles_post_ra>
// kernel: tpu_custom_call.1
= control target key start
LH: loop header
LB: loop body
LE: loop exit
PB: predicated region body
PF: predicated region fallthrough
CT: control target
= control target key end

     0   :  { %11 = vsyncpa [#allocation5], 0  ;;  %v817_v2 = vmov 0   ;;  %s929_s0 = inlined_call_operand.vmem [shape: bf16[128,128], index: 0, kind: input, shape index: {}]   ;;  %s930_s1 = inlined_call_operand.vmem [shape: bf16[128,128], index: 1, kind: input, shape index: {}]   ;;  %s931_s2 = inlined_call_operand.vmem [shape: s32[1,128], index: 2, kind: input, shape index: {}]   ;;  %s932_s3 = inlined_call_operand.vmem [shape: s32[128,1], index: 3, kind: input, shape index: {}]   ;;  %s933_s4 = inlined_call_operand.hbm [shape: f32[1,128], index: 4, kind: output, shape index: {0}]   ;;  %s934_s5 = inlined_call_operand.hbm [shape: f32[1,128], index: 5, kind: output, shape index: {1}]  }
   0x1   :  { %v747_v0 = vld [vmem:[%s929_s0] sm:$0xff]   ;;  %v748_v1 = vld [vmem:[%s929_s0 + $0x8] sm:$0xff]   ;;  %746 = vset.pattern.permute.xlu0 %v817_v2  ;;  %v749_v3 = vld [vmem:[%s929_s0 + $0x10] sm:$0xff]  }
   0x2   :  { %694 = vmatprep.subr.bf16.mxu0 %v747_v0  ;;  %726 = vmatprep.subr.bf16.mxu1 %v747_v0  ;;  %v755_v4 = vld [vmem:[%s930_s1] sm:$0xff]   ;;  %v750_v6 = vld [vmem:[%s929_s0 + $0x18] sm:$0xff]  }
   0x3   :  { %695 = vmatpush3.bf16.xpose.msra.mxu0 %v747_v0  ;;  %734 = vmatpush3.bf16.xpose.msra.mxu1 %v747_v0  ;;  %v757_v5 = vld [vmem:[%s930_s1 + $0x20] sm:$0xff]  }
   0x4   :  { %696 = vmatprep.subr.bf16.mxu0 %v748_v1  ;;  %727 = vmatprep.subr.bf16.mxu1 %v748_v1  ;;  %v287_v7 = vld [vmem:[%s932_s3] sm:$0xff] }
   0x5   :  { %710 = vmatprep.mubr.bf16.mxu0 %v755_v4  ;;  %718 = vmatprep.mubr.bf16.mxu1 %v757_v5 }
   0xb   :  { %697 = vmatpush3.bf16.xpose.msra.mxu0 %v748_v1  ;;  %735 = vmatpush3.bf16.xpose.msra.mxu1 %v748_v1 }
   0xc   :  { %698 = vmatprep.subr.bf16.mxu0 %v749_v3  ;;  %728 = vmatprep.subr.bf16.mxu1 %v749_v3 }
   0xd   :  { %12 = vsyncpa [#allocation7], 0  ;;  %304 = vperm.xlu0 %746, %v287_v7   ;;  %v751_v8 = vld [vmem:[%s929_s0 + $0x20] sm:$0xff]   ;;  %v752_v9 = vld [vmem:[%s929_s0 + $0x28] sm:$0xff]   ;;  %v818_v18 = vmov 0.0   ;;  %v387_v28 = vlaneseq }
   0xe   :  { %v753_v10 = vld [vmem:[%s929_s0 + $0x30] sm:$0xff]   ;;  %v754_v11 = vld [vmem:[%s929_s0 + $0x38] sm:$0xff]   ;;  %v756_v12 = vld [vmem:[%s930_s1 + $0x8] sm:$0xff]   ;;  %28 = vst [vmem:[#allocation2] sm:$0x1] %v818_v18 }
   0xf   :  { %v758_v13 = vld [vmem:[%s930_s1 + $0x28] sm:$0xff]   ;;  %v759_v14 = vld [vmem:[%s930_s1 + $0x10] sm:$0xff]   ;;  %v761_v16 = vld [vmem:[%s930_s1 + $0x18] sm:$0xff]   ;;  %29 = vst [vmem:[#allocation3] sm:$0x1] %v818_v18  ;;  %v388_v30 = vshrl.u32 %v387_v28, 7 }
  0x10   :  { %v760_v15 = vld [vmem:[%s930_s1 + $0x30] sm:$0xff]   ;;  %v762_v17 = vld [vmem:[%s930_s1 + $0x38] sm:$0xff]   ;;  %v422_v31 = vand.u32 127, %v387_v28  ;;  %v677_v36 = vld [vmem:[%s931_s2] ss:$0 sm:$0xff]  ;;  %s819_s2 = smov [#allocation6]  }
  0x11   :  { %s649_s26 = sshll.u32 %s819_s2, 4  ;;  %s650_s26 = int_to_ptr.vmem [resolvable:$true] %s649_s26 }
  0x12   :  { %vm425_vm0 = vcmp.ne.s32.totalorder %v388_v30, %v422_v31  ;;  %s769_s27 = scalar_lea.vmem %s650_s26, 16  ;;  %s773_s28 = scalar_lea.vmem %s650_s26, 32 }
  0x13   :  { %699 = vmatpush3.bf16.xpose.msra.mxu0 %v749_v3  ;;  %736 = vmatpush3.bf16.xpose.msra.mxu1 %v749_v3  ;;  %p770_p0 = scmp.ne.s32.totalorder %s650_s26, %s769_s27  ;;  %p774_p1 = scmp.lt.s32.totalorder %s650_s26, %s650_s26 }
  0x14   :  { %700 = vmatprep.subr.bf16.mxu0 %v750_v6  ;;  %729 = vmatprep.subr.bf16.mxu1 %v750_v6  ;;  %p775_p2 = scmp.lt.s32.totalorder %s773_s28, %s769_s27 }
  0x15   :  { %v513_v56 = vld [vmem:[#allocation2] sm:$0x1] }
  0x16   :  { %v489_v53 = vld [vmem:[#allocation3] sm:$0x1]  ;;  %p776_p3 = por %p775_p2, %p774_p1 }
  0x18   :  { %p777_p4 = pnand %p776_p3, %p770_p0 }
  0x1b   :  { %701 = vmatpush3.bf16.xpose.msra.mxu0 %v750_v6  ;;  %737 = vmatpush3.bf16.xpose.msra.mxu1 %v750_v6 }
  0x1c   :  { %702 = vmatprep.subr.bf16.mxu0 %v751_v8  ;;  %730 = vmatprep.subr.bf16.mxu1 %v751_v8 }
  0x23   :  { %703 = vmatpush3.bf16.xpose.msra.mxu0 %v751_v8  ;;  %738 = vmatpush3.bf16.xpose.msra.mxu1 %v751_v8 }
  0x24   :  { %704 = vmatprep.subr.bf16.mxu0 %v752_v9  ;;  %731 = vmatprep.subr.bf16.mxu1 %v752_v9 }
  0x2b   :  { %705 = vmatpush3.bf16.xpose.msra.mxu0 %v752_v9  ;;  %739 = vmatpush3.bf16.xpose.msra.mxu1 %v752_v9 }
  0x2c   :  { %706 = vmatprep.subr.bf16.mxu0 %v753_v10  ;;  %732 = vmatprep.subr.bf16.mxu1 %v753_v10 }
  0x33   :  { %707 = vmatpush3.bf16.xpose.msra.mxu0 %v753_v10  ;;  %740 = vmatpush3.bf16.xpose.msra.mxu1 %v753_v10 }
  0x34   :  { %708 = vmatprep.subr.bf16.mxu0 %v754_v11  ;;  %733 = vmatprep.subr.bf16.mxu1 %v754_v11 }
  0x3b   :  { %709 = vmatpush3.bf16.xpose.msra.mxu0 %v754_v11  ;;  %741 = vmatpush3.bf16.xpose.msra.mxu1 %v754_v11 }
  0x42   :  { %711 = vmatmul.mubr.bf16.vlgmr.msra.gmra.mrb[0].mxu0 %v756_v12  ;;  %719 = vmatmul.mubr.bf16.vlgmr.msra.gmra.mrb[0].mxu1 %v758_v13 }
  0x43   :  { %714 = vmatprep.mubr.bf16.mxu0 %v759_v14  ;;  %722 = vmatprep.mubr.bf16.mxu1 %v760_v15 }
  0x4a   :  { %715 = vmatmul.mubr.bf16.gmra.mrb[4].mxu0 %v761_v16  ;;  %723 = vmatmul.mubr.bf16.gmra.mrb[4].mxu1 %v762_v17 }
  0x8c   :  { %v305_v29 = vpop.permute.xlu0 %304 }
  0x8d   :  { %vm356_vm1 = vcmp.eq.s32.totalorder %v305_v29, %v677_v36 }
 0x115   :  { %v712_v19 = vpop.f32.mrb[0].mxu0  ;;  %v720_v20 = vpop.f32.mrb[0].mxu1 }
 0x116   :  { %v192_v21 = vpop.f32.mrb[1].mxu0  ;;  %v224_v22 = vpop.f32.mrb[1].mxu1 }
 0x117   :  { %v255_v23 = vmul.f32 1.442695, %v192_v21  ;;  %v713_v24 = vpop.f32.mrb[2].mxu0  ;;  %v721_v25 = vpop.f32.mrb[2].mxu1 }
 0x118   :  { %v195_v26 = vpop.f32.mrb[3].mxu0  ;;  %v227_v27 = vpop.f32.mrb[3].mxu1 }
 0x119   :  { %763 = vpow2.f32 %v255_v23 }
 0x11d   :  { %v716_v32 = vpop.f32.mrb[4].mxu0  ;;  %v724_v33 = vpop.f32.mrb[4].mxu1 }
 0x11e   :  { %v208_v34 = vpop.f32.mrb[5].mxu0  ;;  %v240_v35 = vpop.f32.mrb[5].mxu1 }
 0x11f   :  { %v717_v37 = vpop.f32.mrb[6].mxu0  ;;  %v725_v38 = vpop.f32.mrb[6].mxu1 }
 0x120   :  { %v211_v39 = vpop.f32.mrb[7].mxu0  ;;  %v243_v40 = vpop.f32.mrb[7].mxu1 }
 0x123   :  { %v764_v41 = vpop.eup %763 }
 0x124   :  { %v473_v42 = vsel %vm425_vm0, %v764_v41, 0.0 }
 0x125   :  { %v505_v43 = vrot.slane %v473_v42, 4  ;;  %v514_v44 = vsel %vm356_vm1, %v473_v42, 0.0 }
 0x126   :  { %v545_v45 = vrot.slane %v514_v44, 4 }
 0x127   :  { %v506_v46 = vadd.f32 %v505_v43, %v473_v42 }
 0x128   :  { %v546_v47 = vadd.f32 %v545_v45, %v514_v44 }
 0x129   :  { %v507_v48 = vrot.slane %v506_v46, 2 }
 0x12a   :  { %v547_v49 = vrot.slane %v546_v47, 2 }
 0x12b   :  { %v508_v50 = vadd.f32 %v507_v48, %v506_v46 }
 0x12c   :  { %v548_v51 = vadd.f32 %v547_v49, %v546_v47 }
 0x12d   :  { %v509_v52 = vrot.slane %v508_v50, 1 }
 0x12e   :  { %v549_v54 = vrot.slane %v548_v51, 1 }
 0x12f   :  { %v510_v55 = vadd.f32 %v509_v52, %v508_v50 }
 0x130   :  { %v550_v57 = vadd.f32 %v549_v54, %v548_v51 }
 0x131   :  { %v511_v58 = vadd.f32 %v510_v55, %v489_v53 }
 0x132   :  { %v551_v59 = vadd.f32 %v550_v57, %v513_v56 }
 0x133   :  { %512 = vst [vmem:[#allocation3] sm:$0x1] %v511_v58 }
 0x134   :  { %552 = vst [vmem:[#allocation2] sm:$0x1] %v551_v59 }
 0x13a   :  { %v624_v60 = vld [vmem:[#allocation3] sm:$0x1] }
 0x13b   :  { %v622_v61 = vld [vmem:[#allocation2] sm:$0x1]  ;;  %v625_v62 = vmax.f32 %v624_v60, 1e-08 }
 0x13c   :  { %v623_v63 = vmax.f32 %v622_v61, 1e-08 }
 0x13d   :  { %765 = vrcp.f32 %v625_v62 }
 0x13e   :  { %632 = vst [vmem:[#allocation6] sm:$0x1] %v623_v63 }
 0x13f   :  { %780 = shalt.err (!%p777_p4)
}
 0x140   :  { %s781_s6 = scalar_lea.hbm %s934_s5, 16 }
 0x141   :  { %p782_p5 = scmp.ne.s32.totalorder %s934_s5, %s781_s6  ;;  %p785_p6 = scmp.lt.u32.totalorder %s781_s6, %s934_s5 }
 0x143   :  { %p787_p7 = pnand %p785_p6, %p782_p5 }
 0x145   :  { %790 = shalt.err (!%p787_p7)
}
 0x146   :  { %652 = dma.vmem_to_hbm [thread:$0]  %s650_s26, 16, %s934_s5, [#allocation7]  }
 0x147   :  { %v766_v0 = vpop.eup %765  ;;  %s820_s12 = smov [#allocation4]  }
 0x148   :  { %v627_v1 = vmul.f32 %v766_v0, %v623_v63  ;;  %s639_s13 = sshll.u32 %s820_s12, 4  ;;  %s640_s13 = int_to_ptr.vmem [resolvable:$true] %s639_s13 }
 0x149   :  { %s791_s14 = scalar_lea.vmem %s640_s13, 16  ;;  %s795_s15 = scalar_lea.vmem %s640_s13, 32 }
 0x14a   :  { %767 = vlog2.f32 %v627_v1  ;;  %p792_p8 = scmp.ne.s32.totalorder %s640_s13, %s791_s14  ;;  %p796_p9 = scmp.lt.s32.totalorder %s640_s13, %s640_s13 }
 0x14b   :  { %p797_p10 = scmp.lt.s32.totalorder %s795_s15, %s791_s14 }
 0x14d   :  { %p798_p11 = por %p797_p10, %p796_p9 }
 0x14f   :  { %p799_p12 = pnand %p798_p11, %p792_p8 }
 0x154   :  { %v768_v2 = vpop.eup %767 }
 0x155   :  { %v629_v3 = vmul.f32 0.6931472, %v768_v2 }
 0x157   :  { %v630_v4 = vsub.f32 0.0, %v629_v3 }
 0x159   :  { %631 = vst [vmem:[#allocation4] sm:$0x1] %v630_v4 }
 0x15a   :  { %802 = shalt.err (!%p799_p12)
}
 0x15b   :  { %s803_s17 = scalar_lea.hbm %s933_s4, 16 }
 0x15c   :  { %p804_p13 = scmp.ne.s32.totalorder %s933_s4, %s803_s17  ;;  %p807_p0 = scmp.lt.u32.totalorder %s803_s17, %s933_s4 }
 0x15e   :  { %p809_p1 = pnand %p807_p0, %p804_p13 }
 0x160   :  { %812 = shalt.err (!%p809_p1)
}
 0x161   :  { %642 = dma.vmem_to_hbm [thread:$0]  %s640_s13, 16, %s933_s4, [#allocation5]  }
 0x162   :  { %813 = dma.done.wait [#allocation5], 16  }
 0x163   :  { %814 = vsyncadd [#allocation5], 4294967280 }
 0x164   :  { %815 = dma.done.wait [#allocation7], 16  }
 0x165   :  { %816 = vsyncadd [#allocation7], 4294967280 }
 0x166   :  { %659 = vsyncpa [#allocation5], 1 }
 0x167   :  { %660 = vsyncpa [#allocation7], 1 }

</bundles_post_ra>
